<compile_context>
chip_gen: v6e
topology: v6e:2x2x1
jax: 0.10.0
libtpu: 0.0.40
codegen_flags: <defaults>
</compile_context>

<pallas_src>
import numpy as np
import jax
import jax.numpy as jnp
from jax.experimental import pallas as pl
from jax.experimental.pallas import tpu as pltpu


# ---------------------------------------------------------------------------
# Fused kernel: global-avg-pool -> Linear -> ReLU -> Linear -> Sigmoid
# ---------------------------------------------------------------------------
def _se_kernel(x_ref, w1_ref, b1_ref, w2_ref, b2_ref, o_ref):
    # x_ref : (B, C, HW)   w1_ref: (C, Hd)   b1_ref: (1, Hd)
    # w2_ref: (Hd, P)      b2_ref: (1, P)    o_ref : (B, P)
    pooled = jnp.mean(x_ref[...], axis=-1)                                   # (B, C)
    h = jnp.dot(pooled, w1_ref[...], preferred_element_type=jnp.float32)
    h = jnp.maximum(h + b1_ref[...], 0.0)                                    # (B, Hd)
    y = jnp.dot(h, w2_ref[...], preferred_element_type=jnp.float32)
    y = y + b2_ref[...]                                                      # (B, P)
    o_ref[...] = (1.0 / (1.0 + jnp.exp(-y))).astype(o_ref.dtype)             # sigmoid


# ---------------------------------------------------------------------------
# Wrapper
# ---------------------------------------------------------------------------
def se_layer_forward(x_nchw, w1, b1, w2, b2):
    """x: (B, C, H, W); w1: (C, Hd); b1: (Hd,); w2: (Hd, P); b2: (P,).

    Returns the SE gate of shape (B, P, 1, 1), matching the PyTorch module
    (which returns the gate itself, not x * gate).
    """
    B, C, H, W = x_nchw.shape
    HW = H * W
    Hd = w1.shape[1]
    P = w2.shape[1]

    # Free reshape (no relayout): spatial stays contiguous on the lane axis.
    x3 = x_nchw.reshape(B, C, HW)

    out = pl.pallas_call(
        _se_kernel,
        out_shape=jax.ShapeDtypeStruct((B, P), jnp.float32),
        grid_spec=pltpu.PrefetchScalarGridSpec(
            num_scalar_prefetch=0,
            grid=(1,),  # whole problem fits in VMEM -> single fused step
            in_specs=[
                pl.BlockSpec((B, C, HW), lambda i: (0, 0, 0)),
                pl.BlockSpec((C, Hd), lambda i: (0, 0)),
                pl.BlockSpec((1, Hd), lambda i: (0, 0)),
                pl.BlockSpec((Hd, P), lambda i: (0, 0)),
                pl.BlockSpec((1, P), lambda i: (0, 0)),
            ],
            out_specs=pl.BlockSpec((B, P), lambda i: (0, 0)),
        ),
        compiler_params=pltpu.CompilerParams(
            dimension_semantics=("arbitrary",)),
    )(x3, w1, b1.reshape(1, Hd), w2, b2.reshape(1, P))

    # Free reshape to the PyTorch output shape.
    return out.reshape(B, P, 1, 1)
    # TODO(synk): at production scales (very large B or C*H*W), tile the batch
    # / spatial axes across a grid instead of a single full-VMEM block.


# ---------------------------------------------------------------------------
# Pure-JAX reference (same math, no Pallas)
# ---------------------------------------------------------------------------
def se_layer_reference(x_nchw, w1, b1, w2, b2):
    B = x_nchw.shape[0]
    P = w2.shape[1]
    pooled = jnp.mean(x_nchw, axis=(2, 3))                   # (B, C)
    h = jnp.maximum(pooled @ w1 + b1, 0.0)                   # (B, Hd)
    y = jax.nn.sigmoid(h @ w2 + b2)                          # (B, P)
    return y.reshape(B, P, 1, 1)


# ---------------------------------------------------------------------------
if __name__ == "__main__":
    key = jax.random.PRNGKey(0)
    B, in_planes, H, W = 2, 64, 16, 16
    out_planes, reduction = 64, 16
    hidden = out_planes // reduction                         # 4

    k = jax.random.split(key, 5)
    x = jax.random.normal(k[0], (B, in_planes, H, W), jnp.float32)
    # Linear weights stored already transposed ((in, out)) relative to PyTorch.
    w1 = 0.2 * jax.random.normal(k[1], (in_planes, hidden), jnp.float32)
    b1 = 0.1 * jax.random.normal(k[2], (hidden,), jnp.float32)
    w2 = 0.2 * jax.random.normal(k[3], (hidden, out_planes), jnp.float32)
    b2 = 0.1 * jax.random.normal(k[4], (out_planes,), jnp.float32)

    out = jax.block_until_ready(se_layer_forward(x, w1, b1, w2, b2))
    ref = jax.block_until_ready(se_layer_reference(x, w1, b1, w2, b2))

    assert out.shape == (B, out_planes, 1, 1), out.shape
    assert bool(jnp.all(jnp.isfinite(out)))
    np.testing.assert_allclose(np.asarray(out), np.asarray(ref),
                               rtol=1e-4, atol=1e-4)

    print("KERNEL_OK")
</pallas_src>

<mosaic_0001>
module attributes {stable_mosaic.version = 11 : i64} {
  func.func @_se_kernel(%arg0: i32, %arg1: memref<2x64x256xf32, #tpu.memory_space<vmem>>, %arg2: memref<64x4xf32, #tpu.memory_space<vmem>>, %arg3: memref<1x4xf32, #tpu.memory_space<vmem>>, %arg4: memref<4x64xf32, #tpu.memory_space<vmem>>, %arg5: memref<1x64xf32, #tpu.memory_space<vmem>>, %arg6: memref<2x64xf32, #tpu.memory_space<vmem>>) attributes {dimension_semantics = [#tpu.dimension_semantics<arbitrary>], iteration_bounds = array<i64: 1>, scalar_prefetch = 0 : i64, scratch_operands = 0 : i64, tpu.core_type = #tpu.core_type<tc>, window_params = [{pipeline_mode = #tpu.pipeline_mode<synchronous>, transform_indices = @transform_0, window_bounds = array<i64: 2, 64, 256>}, {pipeline_mode = #tpu.pipeline_mode<synchronous>, transform_indices = @transform_1, window_bounds = array<i64: 64, 4>}, {pipeline_mode = #tpu.pipeline_mode<synchronous>, transform_indices = @transform_2, window_bounds = array<i64: 1, 4>}, {pipeline_mode = #tpu.pipeline_mode<synchronous>, transform_indices = @transform_3, window_bounds = array<i64: 4, 64>}, {pipeline_mode = #tpu.pipeline_mode<synchronous>, transform_indices = @transform_4, window_bounds = array<i64: 1, 64>}, {pipeline_mode = #tpu.pipeline_mode<synchronous>, transform_indices = @transform_5, window_bounds = array<i64: 2, 64>}]} {
    %c0 = arith.constant 0 : index
    %c0_0 = arith.constant 0 : index
    %c0_1 = arith.constant 0 : index
    %0 = vector.load %arg1[%c0, %c0_0, %c0_1] : memref<2x64x256xf32, #tpu.memory_space<vmem>>, vector<2x64x256xf32>
    %cst = arith.constant dense<0.000000e+00> : vector<2x64xf32>
    %1 = vector.multi_reduction <add>, %0, %cst [2] : vector<2x64x256xf32> to vector<2x64xf32>
    %cst_2 = arith.constant 2.560000e+02 : f32
    %2 = vector.broadcast %cst_2 : f32 to vector<2x64xf32>
    %3 = arith.divf %1, %2 : vector<2x64xf32>
    %c0_3 = arith.constant 0 : index
    %c0_4 = arith.constant 0 : index
    %4 = vector.load %arg2[%c0_3, %c0_4] : memref<64x4xf32, #tpu.memory_space<vmem>>, vector<64x4xf32>
    %cst_5 = arith.constant dense<0.000000e+00> : vector<2x4xf32>
    %5 = tpu.matmul %3, %4, %cst_5 {dimension_numbers = #tpu.dot_dimension_numbers<[1], [0], [0], [1], [0, 0, 1, 1], [], []>} : vector<2x64xf32>, vector<64x4xf32>, vector<2x4xf32> -> vector<2x4xf32>
    %c0_6 = arith.constant 0 : index
    %c0_7 = arith.constant 0 : index
    %6 = vector.load %arg3[%c0_6, %c0_7] : memref<1x4xf32, #tpu.memory_space<vmem>>, vector<1x4xf32>
    %7 = vector.broadcast %6 : vector<1x4xf32> to vector<2x4xf32>
    %8 = arith.addf %5, %7 : vector<2x4xf32>
    %cst_8 = arith.constant 0.000000e+00 : f32
    %9 = vector.broadcast %cst_8 : f32 to vector<2x4xf32>
    %10 = arith.maximumf %8, %9 : vector<2x4xf32>
    %c0_9 = arith.constant 0 : index
    %c0_10 = arith.constant 0 : index
    %11 = vector.load %arg4[%c0_9, %c0_10] : memref<4x64xf32, #tpu.memory_space<vmem>>, vector<4x64xf32>
    %cst_11 = arith.constant dense<0.000000e+00> : vector<2x64xf32>
    %12 = tpu.matmul %10, %11, %cst_11 {dimension_numbers = #tpu.dot_dimension_numbers<[1], [0], [0], [1], [0, 0, 1, 1], [], []>} : vector<2x4xf32>, vector<4x64xf32>, vector<2x64xf32> -> vector<2x64xf32>
    %c0_12 = arith.constant 0 : index
    %c0_13 = arith.constant 0 : index
    %13 = vector.load %arg5[%c0_12, %c0_13] : memref<1x64xf32, #tpu.memory_space<vmem>>, vector<1x64xf32>
    %14 = vector.broadcast %13 : vector<1x64xf32> to vector<2x64xf32>
    %15 = arith.addf %12, %14 : vector<2x64xf32>
    %cst_14 = arith.constant 0.000000e+00 : f32
    %16 = vector.broadcast %cst_14 : f32 to vector<2x64xf32>
    %17 = arith.subf %16, %15 : vector<2x64xf32>
    %18 = math.exp %17 : vector<2x64xf32>
    %cst_15 = arith.constant 1.000000e+00 : f32
    %19 = vector.broadcast %cst_15 : f32 to vector<2x64xf32>
    %20 = arith.addf %19, %18 : vector<2x64xf32>
    %cst_16 = arith.constant 1.000000e+00 : f32
    %21 = vector.broadcast %cst_16 : f32 to vector<2x64xf32>
    %22 = arith.divf %21, %20 : vector<2x64xf32>
    %c0_17 = arith.constant 0 : index
    %c0_18 = arith.constant 0 : index
    %23 = vector.load %arg6[%c0_17, %c0_18] : memref<2x64xf32, #tpu.memory_space<vmem>>, vector<2x64xf32>
    tpu.vector_store %arg6[%c0_17, %c0_18], %22 {strides = array<i32>} : memref<2x64xf32, #tpu.memory_space<vmem>>, vector<2x64xf32>,
    return
  }
  func.func @transform_0(%arg0: i32) -> (i32, i32, i32) {
    %c0_i32 = arith.constant 0 : i32
    %c0_i32_0 = arith.constant 0 : i32
    %c0_i32_1 = arith.constant 0 : i32
    %c0_i32_2 = arith.constant 0 : i32
    return %c0_i32, %c0_i32_0, %c0_i32_1 : i32, i32, i32
  }
  func.func @transform_1(%arg0: i32) -> (i32, i32) {
    %c0_i32 = arith.constant 0 : i32
    %c0_i32_0 = arith.constant 0 : i32
    %c0_i32_1 = arith.constant 0 : i32
    return %c0_i32, %c0_i32_0 : i32, i32
  }
  func.func @transform_2(%arg0: i32) -> (i32, i32) {
    %c0_i32 = arith.constant 0 : i32
    %c0_i32_0 = arith.constant 0 : i32
    %c0_i32_1 = arith.constant 0 : i32
    return %c0_i32, %c0_i32_0 : i32, i32
  }
  func.func @transform_3(%arg0: i32) -> (i32, i32) {
    %c0_i32 = arith.constant 0 : i32
    %c0_i32_0 = arith.constant 0 : i32
    %c0_i32_1 = arith.constant 0 : i32
    return %c0_i32, %c0_i32_0 : i32, i32
  }
  func.func @transform_4(%arg0: i32) -> (i32, i32) {
    %c0_i32 = arith.constant 0 : i32
    %c0_i32_0 = arith.constant 0 : i32
    %c0_i32_1 = arith.constant 0 : i32
    return %c0_i32, %c0_i32_0 : i32, i32
  }
  func.func @transform_5(%arg0: i32) -> (i32, i32) {
    %c0_i32 = arith.constant 0 : i32
    %c0_i32_0 = arith.constant 0 : i32
    %c0_i32_1 = arith.constant 0 : i32
    return %c0_i32, %c0_i32_0 : i32, i32
  }
}

</mosaic_0001>

<bundles_post_ra>
// kernel: tpu_custom_call.1
= control target key start
LH: loop header
LB: loop body
LE: loop exit
PB: predicated region body
PF: predicated region fallthrough
CT: control target
= control target key end

     0   :  { %10 = vsyncpa [#allocation3], 0  ;;  %s623_s0 = inlined_call_operand.hbm [shape: f32[2,64,256], index: 0, kind: input, shape index: {}]   ;;  %s624_s1 = inlined_call_operand.vmem [shape: f32[64,4], index: 1, kind: input, shape index: {}]   ;;  %s625_s2 = inlined_call_operand.vmem [shape: f32[1,4], index: 2, kind: input, shape index: {}]   ;;  %s626_s3 = inlined_call_operand.vmem [shape: f32[4,64], index: 3, kind: input, shape index: {}]   ;;  %s627_s4 = inlined_call_operand.vmem [shape: f32[1,64], index: 4, kind: input, shape index: {}]   ;;  %s628_s5 = inlined_call_operand.hbm [shape: f32[2,64], index: 5, kind: output, shape index: {}]  }
   0x1   :  { %11 = vsyncpa [#allocation4], 0  ;;  %s536_s18 = smov [#allocation2]  }
   0x2   :  { %s17_s19 = sshll.u32 %s536_s18, 4  ;;  %s18_s19 = int_to_ptr.vmem [resolvable:$true] %s17_s19 }
   0x3   :  { %s500_s20 = scalar_lea.vmem %s18_s19, 4096  ;;  %p505_p1 = scmp.lt.s32.totalorder %s18_s19, %s18_s19 }
   0x4   :  { %p501_p0 = scmp.ne.s32.totalorder %s18_s19, %s500_s20  ;;  %p506_p2 = scmp.lt.s32.totalorder %s500_s20, %s500_s20 }
   0x6   :  { %p507_p3 = por %p506_p2, %p505_p1 }
   0x8   :  { %p508_p4 = pnand %p507_p3, %p501_p0 }
   0xa   :  { %511 = shalt.err (!%p508_p4)
}
   0xb   :  { %s537_s21 = smov 256   ;;  %s538_s22 = smov 16  }
   0xc   :  { %23 = dma.hbm_to_vmem [thread:$0]  %s623_s0, 4096, %s18_s19, [#allocation3], %s537_s21, %s537_s21, %s538_s22  }
   0xd   :  { %532 = dma.done.wait [#allocation3], 4096  }
   0xe   :  { %533 = vsyncadd [#allocation3], 4294963200  ;;  %v51_v0 = vld [vmem:[#allocation2 + $0x80] sm:$0xff]  ;;  %v52_v1 = vld [vmem:[#allocation2 + $0x88] sm:$0xff]  ;;  %v539_v48 = vmov 0.0   ;;  %vm540_vm0 = vmmov 0   ;;  %v163_v61 = vlaneseq }
   0xf   :  { %v35_v2 = vld [vmem:[#allocation2] sm:$0xff]  ;;  %v91_v3 = vadd.f32 %v52_v1, %v51_v0  ;;  %v36_v4 = vld [vmem:[#allocation2 + $0x8] sm:$0xff]  ;;  %v53_v5 = vld [vmem:[#allocation2 + $0x90] sm:$0xff]  ;;  %458 = vmatprep.subr.mxu0 %v539_v48  ;;  %477 = vmatprep.subr.mxu1 %v539_v48  ;;  %vm174_vm1 = vcmask 130112   ;;  %vm181_vm2 = vcmask 195712   ;;  %vm188_vm3 = vcmask 261312  }
  0x10   :  { %v54_v6 = vld [vmem:[#allocation2 + $0x98] sm:$0xff]  ;;  %v67_v7 = vadd.f32 %v36_v4, %v35_v2  ;;  %v37_v8 = vld [vmem:[#allocation2 + $0x10] sm:$0xff]  ;;  %v55_v12 = vld [vmem:[#allocation2 + $0xa0] sm:$0xff]  ;;  %474 = vmatprep.mubr.msk.f32.mxu0 %vm540_vm0, %v539_v48  ;;  %479 = vmatprep.mubr.msk.f32.mxu1 %vm540_vm0, %v539_v48  ;;  %v164_v0 = vand.u32 127, %v163_v61  ;;  %v166_v2 = vshrl.u32 %v163_v61, 7  ;;  %vm195_vm4 = vcmask 326912  }
  0x11   :  { %v38_v9 = vld [vmem:[#allocation2 + $0x18] sm:$0xff]  ;;  %92 = vadd.xlane.f32.xlu1 %v91_v3  ;;  %v94_v10 = vadd.f32 %v54_v6, %v53_v5  ;;  %v56_v13 = vld [vmem:[#allocation2 + $0xa8] sm:$0xff]  ;;  %v39_v14 = vld [vmem:[#allocation2 + $0x20] sm:$0xff]  ;;  %vm202_vm5 = vcmask 392512   ;;  %vm209_vm6 = vcmask 458112   ;;  %vm216_vm7 = vcmask 523712  }
  0x12   :  { %68 = vadd.xlane.f32.xlu0 %v67_v7  ;;  %v70_v11 = vadd.f32 %v38_v9, %v37_v8  ;;  %v40_v15 = vld [vmem:[#allocation2 + $0x28] sm:$0xff]  ;;  %v97_v16 = vadd.f32 %v56_v13, %v55_v12  ;;  %v57_v18 = vld [vmem:[#allocation2 + $0xb0] sm:$0xff]  ;;  %v58_v19 = vld [vmem:[#allocation2 + $0xb8] sm:$0xff]  ;;  %v169_v4 = vadd.s32 4294967288, %v164_v0  ;;  %v176_v5 = vadd.s32 4294967280, %v164_v0 }
  0x13   :  { %v73_v17 = vadd.f32 %v40_v15, %v39_v14  ;;  %v41_v20 = vld [vmem:[#allocation2 + $0x30] sm:$0xff]  ;;  %v42_v21 = vld [vmem:[#allocation2 + $0x38] sm:$0xff]  ;;  %v100_v22 = vadd.f32 %v58_v19, %v57_v18  ;;  %v59_v24 = vld [vmem:[#allocation2 + $0xc0] sm:$0xff]  ;;  %v183_v6 = vadd.s32 4294967272, %v164_v0  ;;  %v190_v7 = vadd.s32 4294967264, %v164_v0 }
  0x14   :  { %v76_v23 = vadd.f32 %v42_v21, %v41_v20  ;;  %v60_v25 = vld [vmem:[#allocation2 + $0xc8] sm:$0xff]  ;;  %v43_v26 = vld [vmem:[#allocation2 + $0x40] sm:$0xff]  ;;  %v61_v30 = vld [vmem:[#allocation2 + $0xd0] sm:$0xff]  ;;  %v197_v9 = vadd.s32 4294967256, %v164_v0  ;;  %v172_v12 = vsub.s32 %v169_v4, %v166_v2  ;;  %v179_v13 = vsub.s32 %v176_v5, %v166_v2 }
  0x15   :  { %95 = vadd.xlane.f32.xlu1 %v94_v10  ;;  %v44_v27 = vld [vmem:[#allocation2 + $0x48] sm:$0xff]  ;;  %v103_v28 = vadd.f32 %v60_v25, %v59_v24  ;;  %v62_v31 = vld [vmem:[#allocation2 + $0xd8] sm:$0xff]  ;;  %v45_v32 = vld [vmem:[#allocation2 + $0x50] sm:$0xff]  ;;  %v167_v10 = vsub.s32 %v164_v0, %v166_v2  ;;  %v204_v14 = vadd.s32 4294967248, %v164_v0  ;;  %vm257_vm8 = vcmask 1041409  }
  0x16   :  { %71 = vadd.xlane.f32.xlu0 %v70_v11  ;;  %v79_v29 = vadd.f32 %v44_v27, %v43_v26  ;;  %v46_v33 = vld [vmem:[#allocation2 + $0x58] sm:$0xff]  ;;  %v106_v34 = vadd.f32 %v62_v31, %v61_v30  ;;  %v63_v36 = vld [vmem:[#allocation2 + $0xe0] sm:$0xff]  ;;  %v64_v37 = vld [vmem:[#allocation2 + $0xe8] sm:$0xff]  ;;  %v200_v20 = vsub.s32 %v197_v9, %v166_v2  ;;  %vm259_vm9 = vcmask 523264  }
  0x17   :  { %v82_v35 = vadd.f32 %v46_v33, %v45_v32  ;;  %v47_v38 = vld [vmem:[#allocation2 + $0x60] sm:$0xff]  ;;  %v48_v39 = vld [vmem:[#allocation2 + $0x68] sm:$0xff]  ;;  %v109_v40 = vadd.f32 %v64_v37, %v63_v36  ;;  %v65_v42 = vld [vmem:[#allocation2 + $0xf0] sm:$0xff]  ;;  %v211_v33 = vadd.s32 4294967240, %v164_v0  ;;  %vm345_vm10 = vcmask 1043456  }
  0x18   :  { %v85_v41 = vadd.f32 %v48_v39, %v47_v38  ;;  %v66_v43 = vld [vmem:[#allocation2 + $0xf8] sm:$0xff]  ;;  %v49_v44 = vld [vmem:[#allocation2 + $0x70] sm:$0xff]  ;;  %v137_v51 = vld [vmem:[%s624_s1 + $0x28] sm:$0xff]  ;;  %vm341_vm11 = vcmask 31744   ;;  %vm425_vm12 = vcmask 517120  }
  0x19   :  { %98 = vadd.xlane.f32.xlu1 %v97_v16  ;;  %v50_v45 = vld [vmem:[#allocation2 + $0x78] sm:$0xff]  ;;  %v112_v46 = vadd.f32 %v66_v43, %v65_v42  ;;  %v138_v50 = vld [vmem:[%s624_s1 + $0x30] sm:$0xff]  ;;  %v136_v52 = vld [vmem:[%s624_s1 + $0x20] sm:$0xff]  ;;  %v186_v16 = vsub.s32 %v183_v6, %v166_v2 }
  0x1a   :  { %74 = vadd.xlane.f32.xlu0 %v73_v17  ;;  %v88_v47 = vadd.f32 %v50_v45, %v49_v44  ;;  %v139_v49 = vld [vmem:[%s624_s1 + $0x38] sm:$0xff]  ;;  %v134_v54 = vld [vmem:[%s624_s1 + $0x10] sm:$0xff]  ;;  %v133_v55 = vld [vmem:[%s624_s1 + $0x8] sm:$0xff]  ;;  %v193_v17 = vsub.s32 %v190_v7, %v166_v2 }
  0x1b   :  { %459 = vmatpush3.msra.mxu0 %v139_v49  ;;  %v135_v53 = vld [vmem:[%s624_s1 + $0x18] sm:$0xff]  ;;  %v132_v56 = vld [vmem:[%s624_s1] sm:$0xff] }
  0x1c   :  { %460 = vmatprep.subr.mxu0 %v539_v48 }
  0x1d   :  { %101 = vadd.xlane.f32.xlu1 %v100_v22  ;;  %461 = vmatpush3.msra.mxu0 %v138_v50  ;;  %v214_v50 = vsub.s32 %v211_v33, %v166_v2 }
  0x1e   :  { %77 = vadd.xlane.f32.xlu0 %v76_v23  ;;  %462 = vmatprep.subr.mxu0 %v539_v48 }
  0x1f   :  { %463 = vmatpush3.msra.mxu0 %v137_v51 }
  0x20   :  { %464 = vmatprep.subr.mxu0 %v539_v48 }
  0x21   :  { %104 = vadd.xlane.f32.xlu1 %v103_v28  ;;  %465 = vmatpush3.msra.mxu0 %v136_v52 }
  0x22   :  { %80 = vadd.xlane.f32.xlu0 %v79_v29  ;;  %466 = vmatprep.subr.mxu0 %v539_v48  ;;  %v207_v29 = vsub.s32 %v204_v14, %v166_v2 }
  0x23   :  { %467 = vmatpush3.msra.mxu0 %v135_v53 }
  0x24   :  { %468 = vmatprep.subr.mxu0 %v539_v48 }
  0x25   :  { %107 = vadd.xlane.f32.xlu1 %v106_v34  ;;  %469 = vmatpush3.msra.mxu0 %v134_v54 }
  0x26   :  { %83 = vadd.xlane.f32.xlu0 %v82_v35  ;;  %470 = vmatprep.subr.mxu0 %v539_v48 }
  0x27   :  { %471 = vmatpush3.msra.mxu0 %v133_v55 }
  0x28   :  { %472 = vmatprep.subr.mxu0 %v539_v48 }
  0x29   :  { %110 = vadd.xlane.f32.xlu1 %v109_v40  ;;  %473 = vmatpush3.msra.mxu0 %v132_v56 }
  0x2a   :  { %86 = vadd.xlane.f32.xlu0 %v85_v41 }
  0x2d   :  { %113 = vadd.xlane.f32.xlu1 %v112_v46 }
  0x2e   :  { %89 = vadd.xlane.f32.xlu0 %v88_v47 }
  0x9a   :  { %v93_v57 = vpop.xlane.xlu1 %92 }
  0x9b   :  { %v69_v58 = vpop.xlane.xlu0 %68  ;;  %v124_v22 = vmul.f32 0.00390625, %v93_v57 }
  0x9c   :  { %v116_v26 = vmul.f32 0.00390625, %v69_v58 }
  0x9d   :  { %v221_v38 = vrot.slane %v124_v22, %v167_v10 }
  0x9e   :  { %v96_v59 = vpop.xlane.xlu1 %95  ;;  %v168_v43 = vrot.slane %v116_v26, %v167_v10  ;;  %v333_v10 = vld [vmem:[%s626_s3] sm:$0xf] }
  0x9f   :  { %v72_v60 = vpop.xlane.xlu0 %71  ;;  %v125_v15 = vmul.f32 0.00390625, %v96_v59  ;;  %478 = vmatpush3.msk.msra.mxu1 %vm345_vm10, %v333_v10 }
  0xa0   :  { %v117_v18 = vmul.f32 0.00390625, %v72_v60 }
  0xa1   :  { %v225_v30 = vrot.slane %v125_v15, %v172_v12 }
  0xa2   :  { %v99_v62 = vpop.xlane.xlu1 %98  ;;  %v173_v34 = vrot.slane %v117_v18, %v172_v12 }
  0xa3   :  { %v75_v63 = vpop.xlane.xlu0 %74  ;;  %v126_v19 = vmul.f32 0.00390625, %v99_v62  ;;  %v226_v47 = vsel %vm174_vm1, %v225_v30, %v221_v38 }
  0xa4   :  { %v118_v23 = vmul.f32 0.00390625, %v75_v63  ;;  %v175_v51 = vsel %vm174_vm1, %v173_v34, %v168_v43 }
  0xa5   :  { %v230_v35 = vrot.slane %v126_v19, %v179_v13 }
  0xa6   :  { %v102_v1 = vpop.xlane.xlu1 %101  ;;  %v180_v39 = vrot.slane %v118_v23, %v179_v13 }
  0xa7   :  { %v78_v3 = vpop.xlane.xlu0 %77  ;;  %v127_v24 = vmul.f32 0.00390625, %v102_v1  ;;  %v231_v52 = vsel %vm181_vm2, %v230_v35, %v226_v47 }
  0xa8   :  { %v119_v27 = vmul.f32 0.00390625, %v78_v3  ;;  %v182_v56 = vsel %vm181_vm2, %v180_v39, %v175_v51 }
  0xa9   :  { %v235_v40 = vrot.slane %v127_v24, %v186_v16 }
  0xaa   :  { %v105_v8 = vpop.xlane.xlu1 %104  ;;  %v187_v44 = vrot.slane %v119_v27, %v186_v16  ;;  %v444_v16 = vld [vmem:[%s627_s4] ss:$0 sm:$0xff] }
  0xab   :  { %v81_v11 = vpop.xlane.xlu0 %80  ;;  %v128_v28 = vmul.f32 0.00390625, %v105_v8  ;;  %v236_v57 = vsel %vm188_vm3, %v235_v40, %v231_v52 }
  0xac   :  { %v120_v31 = vmul.f32 0.00390625, %v81_v11  ;;  %v189_v61 = vsel %vm188_vm3, %v187_v44, %v182_v56  ;;  %v442_v11 = vld [vmem:[%s625_s2] ss:$0 sm:$0xff]  ;;  %s541_s2 = smov [#allocation5]  }
  0xad   :  { %v240_v45 = vrot.slane %v128_v28, %v193_v17  ;;  %s433_s3 = sshll.u32 %s541_s2, 4  ;;  %s434_s3 = int_to_ptr.vmem [resolvable:$true] %s433_s3 }
  0xae   :  { %v108_v21 = vpop.xlane.xlu1 %107  ;;  %v194_v48 = vrot.slane %v120_v31, %v193_v17  ;;  %s512_s20 = scalar_lea.vmem %s434_s3, 32  ;;  %p517_p6 = scmp.lt.s32.totalorder %s434_s3, %s434_s3 }
  0xaf   :  { %v84_v25 = vpop.xlane.xlu0 %83  ;;  %v129_v32 = vmul.f32 0.00390625, %v108_v21  ;;  %v241_v62 = vsel %vm195_vm4, %v240_v45, %v236_v57  ;;  %p513_p5 = scmp.ne.s32.totalorder %s434_s3, %s512_s20  ;;  %p518_p7 = scmp.lt.s32.totalorder %s512_s20, %s512_s20 }
  0xb0   :  { %v121_v36 = vmul.f32 0.00390625, %v84_v25  ;;  %v196_v0 = vsel %vm195_vm4, %v194_v48, %v189_v61 }
  0xb1   :  { %v245_v49 = vrot.slane %v129_v32, %v200_v20  ;;  %p519_p8 = por %p518_p7, %p517_p6 }
  0xb2   :  { %v111_v37 = vpop.xlane.xlu1 %110  ;;  %v201_v53 = vrot.slane %v121_v36, %v200_v20 }
  0xb3   :  { %v130_v41 = vmul.f32 0.00390625, %v111_v37  ;;  %v87_v42 = vpop.xlane.xlu0 %86  ;;  %v246_v1 = vsel %vm202_vm5, %v245_v49, %v241_v62  ;;  %p520_p9 = pnand %p519_p8, %p513_p5 }
  0xb4   :  { %v122_v46 = vmul.f32 0.00390625, %v87_v42  ;;  %v203_v3 = vsel %vm202_vm5, %v201_v53, %v196_v0 }
  0xb5   :  { %v250_v54 = vrot.slane %v130_v41, %v207_v29 }
  0xb6   :  { %v114_v55 = vpop.xlane.xlu1 %113  ;;  %v208_v58 = vrot.slane %v122_v46, %v207_v29 }
  0xb7   :  { %v131_v59 = vmul.f32 0.00390625, %v114_v55  ;;  %v90_v60 = vpop.xlane.xlu0 %89  ;;  %v251_v4 = vsel %vm209_vm6, %v250_v54, %v246_v1 }
  0xb8   :  { %v123_v63 = vmul.f32 0.00390625, %v90_v60  ;;  %v210_v6 = vsel %vm209_vm6, %v208_v58, %v203_v3 }
  0xb9   :  { %v255_v2 = vrot.slane %v131_v59, %v214_v50 }
  0xba   :  { %v215_v5 = vrot.slane %v123_v63, %v214_v50 }
  0xbb   :  { %v256_v7 = vsel %vm216_vm7, %v255_v2, %v251_v4 }
  0xbc   :  { %v217_v8 = vsel %vm216_vm7, %v215_v5, %v210_v6 }
  0xbd   :  { %v258_v9 = vsel %vm257_vm8, %v256_v7, %v217_v8 }
  0xbe   :  { %475 = vmatmul.mubr.msk.f32.vlgmr.msra.gmra.mxu0 %vm259_vm9, %v258_v9 }
 0x17e   :  { %v328_v12 = vpop.f32.mrf.mxu0 }
 0x17f   :  { %v329_v13 = vadd.f32 %v442_v11, %v328_v12 }
 0x180   :  { %v476_v14 = vpop.f32.mrf.mxu0 }
 0x181   :  { %v332_v15 = vmax.f32 %v329_v13, 0.0 }
 0x183   :  { %480 = vmatmul.mubr.msk.f32.vlgmr.msra.gmra.mxu1 %vm341_vm11, %v332_v15 }
 0x243   :  { %v415_v17 = vpop.f32.mrf.mxu1 }
 0x244   :  { %v416_v18 = vadd.f32 %v444_v16, %v415_v17 }
 0x245   :  { %v481_v19 = vpop.f32.mrf.mxu1 }
 0x246   :  { %v419_v20 = vsub.f32 0.0, %v416_v18 }
 0x248   :  { %v420_v21 = vmul.f32 1.442695, %v419_v20 }
 0x24a   :  { %488 = vpow2.f32 %v420_v21 }
 0x257   :  { %v489_v22 = vpop.eup %488 }
 0x258   :  { %v422_v23 = vadd.f32 1.0, %v489_v22 }
 0x25a   :  { %490 = vrcp.f32 %v422_v23 }
 0x267   :  { %v491_v24 = vpop.eup %490 }
 0x268   :  { %426 = vst.msk [vmem:[#allocation5] sm:$0x3] %vm425_vm12, %v491_v24 }
 0x269   :  { %523 = shalt.err (!%p520_p9)
}
 0x26a   :  { %436 = dma.vmem_to_hbm [thread:$0]  %s434_s3, 32, %s628_s5, [#allocation4]  }
 0x26b   :  { %534 = dma.done.wait [#allocation4], 32  }
 0x26c   :  { %535 = vsyncadd [#allocation4], 4294967264 }
 0x26d   :  { %440 = vsyncpa [#allocation3], 1 }
 0x26e   :  { %441 = vsyncpa [#allocation4], 1 }

</bundles_post_ra>
